<compile_context>
chip_gen: v5e
topology: v5e:2x2
jax: 0.10.0
libtpu: 0.0.40
codegen_flags: <defaults>
</compile_context>

<pallas_src>
import math

import jax
import jax.numpy as jnp
from jax.experimental import pallas as pl
from jax.experimental.pallas import tpu as pltpu


def _norm_data_kernel(x_ref, scale_ref, shift_ref, o_ref):
    # x_ref / o_ref : (nb, lb)  lane-dense blocks of the flattened (N, C*V*T) view
    # scale_ref / shift_ref : (1, lb)  folded BN affine, broadcast over sublanes
    o_ref[...] = (x_ref[...] * scale_ref[...] + shift_ref[...]).astype(o_ref.dtype)


def _sublane_multiple(dtype):
    # vreg sublane packing per element width (f32: 8, bf16: 16, 8-bit: 32).
    return {4: 8, 2: 16, 1: 32}.get(jnp.dtype(dtype).itemsize, 8)


def _choose_tiles(n, l, itemsize, sub_mult,
                  target_block_bytes=1 << 20,   # ~1 MiB: measured ~85% of HBM roofline
                  max_block_bytes=4 << 20,      # safe for v5e/v6e/v7x scoped VMEM
                  min_total_steps=4):
    """Pick (nb, lb) block sizes for the (N, L) view.

    nb divides N and is a multiple of `sub_mult` (or equals N); lb divides L and is
    a multiple of 128 (L is pre-padded). Prefer blocks near target_block_bytes while
    keeping >= min_total_steps grid steps so the pipeline can overlap DMA/compute.
    """
    if n % sub_mult == 0:
        nb_cands = [d for d in range(sub_mult, n + 1, sub_mult) if n % d == 0]
    else:
        nb_cands = [n]  # full batch dim on the sublane axis (legal: equals array dim)

    lb_cands = [d for d in range(128, l + 1, 128) if l % d == 0]
    if not lb_cands:
        lb_cands = [l]

    best = None
    for nb in nb_cands:
        for lb in lb_cands:
            bb = nb * lb * itemsize
            if bb > max_block_bytes:
                continue
            steps = (n // nb) * (l // lb)
            size_pen = abs(math.log2(max(bb, 1)) - math.log2(target_block_bytes))
            step_pen = 0.0 if steps >= min_total_steps else 4.0 * (min_total_steps - steps)
            score = size_pen + step_pen
            if best is None or score < best[0]:
                best = (score, nb, lb)

    if best is None:  # everything over the cap -> smallest legal block
        return nb_cands[0], lb_cands[0]
    return best[1], best[2]


def norm_data_forward(x, gamma, beta, running_mean, running_var, eps=1e-5):
    """norm_data forward. x: (N, C, V, T); BN params: (C*V,). Returns (N, C, V, T)."""
    N, C, V, T = x.shape
    CV = C * V
    L = CV * T

    # Fold eval-mode BatchNorm1d into per-channel scale/shift (exact algebra).
    scale = (gamma / jnp.sqrt(running_var + eps)).astype(jnp.float32)   # (CV,)
    shift = (beta - running_mean * scale).astype(jnp.float32)           # (CV,)

    # Broadcast along the frame axis and flatten so the layout matches one
    # row-major x sample -> kernel is a single lane-dense FMA, zero transposes.
    scale_b = jnp.broadcast_to(scale[:, None], (CV, T)).reshape(1, L)
    shift_b = jnp.broadcast_to(shift[:, None], (CV, T)).reshape(1, L)
    x2 = x.reshape(N, L)                                  # zero-copy NCHW view

    # Pad the lane axis to a multiple of 128 so stores stay unmasked full-lane vst.
    L_pad = ((L + 127) // 128) * 128
    if L_pad != L:
        pad = L_pad - L
        x2 = jnp.pad(x2, ((0, 0), (0, pad)))
        scale_b = jnp.pad(scale_b, ((0, 0), (0, pad)))
        shift_b = jnp.pad(shift_b, ((0, 0), (0, pad)))

    itemsize = jnp.dtype(x.dtype).itemsize
    nb, lb = _choose_tiles(N, L_pad, itemsize, _sublane_multiple(x.dtype))
    grid = (N // nb, L_pad // lb)

    # Explicit VMEM budget: double-buffered input + output blocks + params (+margin).
    block_bytes = nb * lb * itemsize
    ss_bytes = lb * scale_b.dtype.itemsize
    vmem_limit = 2 * (2 * block_bytes) + 2 * (2 * ss_bytes) + (1 << 20)
    vmem_limit = int(min(max(vmem_limit, 4 << 20), 32 << 20))

    out = pl.pallas_call(
        _norm_data_kernel,
        out_shape=jax.ShapeDtypeStruct((N, L_pad), x.dtype),
        grid_spec=pl.GridSpec(
            grid=grid,
            in_specs=[
                pl.BlockSpec((nb, lb), lambda i, j: (i, j)),
                pl.BlockSpec((1, lb), lambda i, j: (0, j)),   # constant over batch axis
                pl.BlockSpec((1, lb), lambda i, j: (0, j)),   # constant over batch axis
            ],
            out_specs=pl.BlockSpec((nb, lb), lambda i, j: (i, j)),
        ),
        compiler_params=pltpu.CompilerParams(
            dimension_semantics=("parallel", "parallel"),
            vmem_limit_bytes=vmem_limit,
        ),
    )(x2, scale_b, shift_b)

    if L_pad != L:
        out = out[:, :L]
    return out.reshape(N, C, V, T)


def _reference(x, gamma, beta, running_mean, running_var, eps=1e-5):
    # Pure-JAX reference mirroring the PyTorch forward (eval-mode BN, unfolded).
    N, C, V, T = x.shape
    xr = x.reshape(N, C * V, T)
    y = (xr - running_mean[None, :, None]) / jnp.sqrt(running_var[None, :, None] + eps)
    y = y * gamma[None, :, None] + beta[None, :, None]
    return y.reshape(N, C, V, T)


if __name__ == "__main__":
    key = jax.random.PRNGKey(0)
    # (bs, dim, num_joints, step) -> BatchNorm1d over dim*num_joints = 64 channels
    N, C, V, T = 2, 4, 16, 16
    CV = C * V

    ks = jax.random.split(key, 5)
    x = jax.random.normal(ks[0], (N, C, V, T), dtype=jnp.float32)
    gamma = 1.0 + 0.1 * jax.random.normal(ks[1], (CV,), jnp.float32)
    beta = 0.1 * jax.random.normal(ks[2], (CV,), jnp.float32)
    running_mean = 0.1 * jax.random.normal(ks[3], (CV,), jnp.float32)
    running_var = jnp.abs(1.0 + 0.1 * jax.random.normal(ks[4], (CV,), jnp.float32))

    out = norm_data_forward(x, gamma, beta, running_mean, running_var)
    out = jax.block_until_ready(out)

    ref = _reference(x, gamma, beta, running_mean, running_var)
    assert out.shape == (N, C, V, T)
    assert jnp.allclose(out, ref, atol=1e-4, rtol=1e-5), "mismatch vs reference"

    print("KERNEL_OK")
</pallas_src>

<mosaic_0001>
module attributes {stable_mosaic.version = 11 : i64} {
  func.func @_norm_data_kernel(%arg0: i32, %arg1: i32, %arg2: memref<2x256xf32, #tpu.memory_space<vmem>>, %arg3: memref<1x256xf32, #tpu.memory_space<vmem>>, %arg4: memref<1x256xf32, #tpu.memory_space<vmem>>, %arg5: memref<2x256xf32, #tpu.memory_space<vmem>>) attributes {dimension_semantics = [#tpu.dimension_semantics<parallel>, #tpu.dimension_semantics<parallel>], iteration_bounds = array<i64: 1, 4>, scalar_prefetch = 0 : i64, scratch_operands = 0 : i64, tpu.core_type = #tpu.core_type<tc>, window_params = [{transform_indices = @transform_0, window_bounds = array<i64: 2, 256>}, {transform_indices = @transform_1, window_bounds = array<i64: 1, 256>}, {transform_indices = @transform_2, window_bounds = array<i64: 1, 256>}, {transform_indices = @transform_3, window_bounds = array<i64: 2, 256>}]} {
    %c0 = arith.constant 0 : index
    %c0_0 = arith.constant 0 : index
    %0 = vector.load %arg2[%c0, %c0_0] : memref<2x256xf32, #tpu.memory_space<vmem>>, vector<2x256xf32>
    %c0_1 = arith.constant 0 : index
    %c0_2 = arith.constant 0 : index
    %1 = vector.load %arg3[%c0_1, %c0_2] : memref<1x256xf32, #tpu.memory_space<vmem>>, vector<1x256xf32>
    %2 = vector.broadcast %1 : vector<1x256xf32> to vector<2x256xf32>
    %3 = arith.mulf %0, %2 : vector<2x256xf32>
    %c0_3 = arith.constant 0 : index
    %c0_4 = arith.constant 0 : index
    %4 = vector.load %arg4[%c0_3, %c0_4] : memref<1x256xf32, #tpu.memory_space<vmem>>, vector<1x256xf32>
    %5 = vector.broadcast %4 : vector<1x256xf32> to vector<2x256xf32>
    %6 = arith.addf %3, %5 : vector<2x256xf32>
    %c0_5 = arith.constant 0 : index
    %c0_6 = arith.constant 0 : index
    %7 = vector.load %arg5[%c0_5, %c0_6] : memref<2x256xf32, #tpu.memory_space<vmem>>, vector<2x256xf32>
    tpu.vector_store %arg5[%c0_5, %c0_6], %6 {strides = array<i32>} : memref<2x256xf32, #tpu.memory_space<vmem>>, vector<2x256xf32>,
    return
  }
  func.func @transform_0(%arg0: i32, %arg1: i32) -> (i32, i32) {
    %c0_i32 = arith.constant 0 : i32
    return %arg0, %arg1 : i32, i32
  }
  func.func @transform_1(%arg0: i32, %arg1: i32) -> (i32, i32) {
    %c0_i32 = arith.constant 0 : i32
    %c0_i32_0 = arith.constant 0 : i32
    return %c0_i32, %arg1 : i32, i32
  }
  func.func @transform_2(%arg0: i32, %arg1: i32) -> (i32, i32) {
    %c0_i32 = arith.constant 0 : i32
    %c0_i32_0 = arith.constant 0 : i32
    return %c0_i32, %arg1 : i32, i32
  }
  func.func @transform_3(%arg0: i32, %arg1: i32) -> (i32, i32) {
    %c0_i32 = arith.constant 0 : i32
    return %arg0, %arg1 : i32, i32
  }
}

</mosaic_0001>

<bundles_post_ra>
// kernel: tpu_custom_call.1
= control target key start
LH: loop header
LB: loop body
LE: loop exit
PB: predicated region body
PF: predicated region fallthrough
CT: control target
= control target key end

     0   :  { %s896_s0 = inlined_call_operand.hbm [shape: f32[2,1024], index: 0, kind: input, shape index: {}]   ;;  %s897_s1 = inlined_call_operand.hbm [shape: f32[1,1024], index: 1, kind: input, shape index: {}]   ;;  %s898_s2 = inlined_call_operand.hbm [shape: f32[1,1024], index: 2, kind: input, shape index: {}]   ;;  %s899_s3 = inlined_call_operand.hbm [shape: f32[2,1024], index: 3, kind: output, shape index: {}]  }
   0x1   :  { %901 = sst [smem:[#allocation14_spill]] %s897_s1 }
   0x2   :  { %8 = vsyncpa [#allocation3], 0 }
   0x3   :  { %10 = vsyncpa [#allocation3 + $0x1], 0 }
   0x4   :  { %11 = vsyncpa [#allocation6], 0 }
   0x5   :  { %13 = vsyncpa [#allocation6 + $0x1], 0 }
   0x6   :  { %14 = vsyncpa [#allocation4], 0 }
   0x7   :  { %16 = vsyncpa [#allocation4 + $0x1], 0  ;;  %s744_s12 = smov 0   ;;  %s746_s13 = smov 0  }
   0x8   :  { %s748_s14 = smov 0   ;;  %s750_s15 = smov 0  }
   0x9   :  { %s752_s16 = smov 0   ;;  %s754_s17 = smov 0  }
   0xa LB: > { %s775_s18 = sadd.s32 4294967295, %s722_s17   ;;  %s452_s19 = sadd.s32 4294967294, %s722_s17   ;;  %s722_s17 = sphi %s754_s17, %s22_s17   ;;  %s718_s16 = sphi %s752_s16, %s917_s16   ;;  %s714_s15 = sphi %s750_s15, %s916_s15   ;;  %s710_s14 = sphi %s748_s14, %s915_s14   ;;  %s706_s13 = sphi %s746_s13, %s914_s13   ;;  %s702_s12 = sphi %s744_s12, %s913_s12  }
   0xb   : > { %s31_s20 = sadd.s32 1, %s718_s16  ;;  %s43_s21 = sadd.s32 1, %s710_s14 }
   0xc   : > { %p32_p0 = scmp.ge.s32.totalorder %s31_s20, 4  ;;  %p50_p1 = scmp.ne.s32.totalorder %s710_s14, %s706_s13 }
   0xd   : > { %p51_p2 = scmp.eq.s32.totalorder %s722_s17, 0  ;;  %p56_p3 = scmp.ne.s32.totalorder %s706_s13, %s702_s12 }
   0xe   : > { %s919_s20 = smov (%p32_p0, %s31_s20), 0  ;;  %p57_p5 = scmp.eq.s32.totalorder %s775_s18, 0 }
   0xf   : > { %902 = sst [smem:[#allocation12_spill]] %s919_s20  ;;  %p787_p4 = por %p51_p2, %p50_p1 }
  0x10   : > { %s39_s23 = ssub.s32 %s718_s16, %s919_s20  ;;  %p134_p6 = scmp.eq.s32.totalorder %s775_s18, 3 }
  0x11   : > { %p41_p7 = scmp.eq.s32.totalorder %s39_s23, 0  ;;  %p795_p8 = por %p57_p5, %p56_p3 }
  0x12   : > { %p799_p9 = por %p134_p6, %p50_p1  ;;  %p140_p10 = scmp.eq.s32.totalorder %s452_s19, 3 }
  0x13   : > { %s804_s26 = scalar_select %p41_p7, %s710_s14, %s43_s21  }
  0x14   : > { %p806_p11 = por %p140_p10, %p56_p3  ;;  %p496_p12 = scmp.lt.s32.totalorder %s722_s17, 4 }
  0x15   : > { %906 = sst [smem:[#allocation13_spill]] %s804_s26  ;;  %s160_s28 = sand.u32 1, %s710_s14  }
  0x16   : > { %s182_s29 = sand.u32 1, %s722_s17   ;;  %s458_s30 = sshll.u32 %s160_s28, 1 }
  0x17   : > { %p815_p13 = pnand %p496_p12, %p787_p4  ;;  %s459_s5 = sshll.u32 %s718_s16, 1 }
  0x18   : > { %s909_s1 = sld [smem:[#allocation14_spill]]  ;;  %s186_s10 = scalar_lea.vmem [#allocation5], %s458_s30 }
  0x19   : > { %s194_s11 = sshll.u32 %s186_s10, 4  ;;  %s183_s19 = scalar_lea.sflag [#allocation6], %s182_s29  ;;  %s195_s11 = int_to_ptr.vmem [resolvable:$true] %s194_s11 }
  0x1a   : > { %s209_s23 = scalar_lea.hbm %s898_s2, %s459_s5  ;;  %p462_p0 = scmp.ge.s32.totalorder %s722_s17, 1 }
  0x1b   : > { %p218_p1 = scmp.lt.s32.totalorder %s722_s17, 5  ;;  %s455_s6 = sshll.u32 %s160_s28, 2 }
  0x1c   : > { %s472_s7 = sshll.u32 %s718_s16, 2  ;;  %s164_s26 = scalar_lea.vmem [#allocation2], %s455_s6 }
  0x1d   : > { %p830_p2 = pnand %p462_p0, %p218_p1  ;;  %s205_s21 = scalar_lea.vmem [#allocation7], %s458_s30 }
  0x1e   : > { %s190_s8 = scalar_lea.hbm %s909_s1, %s459_s5  ;;  %s171_s1 = scalar_lea.hbm %s896_s0, %s472_s7 }
  0x1f   : > { %s192_s9 = sshll.u32 %s190_s8, 4  ;;  %s173_s29 = sshll.u32 %s171_s1, 4  ;;  %s193_s9 = int_to_ptr.hbm [resolvable:$true] %s192_s9  ;;  %s174_s29 = int_to_ptr.hbm [resolvable:$true] %s173_s29 }
  0x20   : > { %488 = dma.hbm_to_vmem [thread:$0]  (!%p815_p13), %s193_s9, 32, %s195_s11, %s183_s19  }
  0x21   : > { %s175_s9 = sshll.u32 %s164_s26, 4  ;;  %s161_s11 = scalar_lea.sflag [#allocation3], %s160_s28  ;;  %s176_s9 = int_to_ptr.vmem [resolvable:$true] %s175_s9 }
  0x22   : > { %485 = dma.hbm_to_vmem [thread:$0]  (!%p815_p13), %s174_s29, 64, %s176_s9, %s161_s11  }
  0x23   : > { %s211_s5 = sshll.u32 %s209_s23, 4  ;;  %s213_s22 = sshll.u32 %s205_s21, 4  ;;  %s212_s5 = int_to_ptr.hbm [resolvable:$true] %s211_s5  ;;  %s214_s22 = int_to_ptr.vmem [resolvable:$true] %s213_s22 }
  0x24   : > { %491 = dma.hbm_to_vmem [thread:$0]  (!%p815_p13), %s212_s5, 32, %s214_s22, %s183_s19  }
  0x25   : > { %222 = sbr.rel (%p830_p2) target bundleno = 62 (0x3e), region = 32  ;;  %s845_s1 = sand.u32 (!%p830_p2), 1, %s706_s13  }
  0x26   : > { %s463_s26 = sshll.u32 (!%p830_p2), %s845_s1, 2  ;;  %s225_s28 = scalar_lea.sflag (!%p830_p2), [#allocation3], %s845_s1 }
  0x27   : > { %s228_s6 = scalar_lea.vmem (!%p830_p2), [#allocation2], %s463_s26 }
  0x2a   : > { %689 = dma.done.wait (%p795_p8), %s225_s28, 64  }
  0x2b   : > { %691 = vsyncadd (%p795_p8), %s225_s28, 4294967232  ;;  %s234_s30 = sand.u32 1, %s775_s18   ;;  %s464_s20 = sshll.u32 %s845_s1, 1 }
  0x2c   : > { %s235_s4 = scalar_lea.sflag [#allocation6], %s234_s30  ;;  %s238_s19 = scalar_lea.vmem [#allocation5], %s464_s20 }
  0x2d   : > { %693 = dma.done.wait (%p795_p8), %s235_s4, 64  }
  0x2e   : > { %695 = vsyncadd (%p795_p8), %s235_s4, 4294967232  ;;  %s473_s23 = sshll.u32 %s714_s15, 2  ;;  %v287_v0 = vld [vmem:[%s238_s19] sm:$0x3]  ;;  %s248_s7 = scalar_lea.vmem [#allocation7], %s464_s20  ;;  %vm292_vm0 = vcmask 1041408  }
  0x2f   : > { %v296_v1 = vld [vmem:[%s248_s7] sm:$0x3]  ;;  %v289_v2 = vperm.slane %v287_v0, 0  ;;  %v290_v3 = vperm.slane %v287_v0, 1  ;;  %s319_s10 = scalar_lea.hbm %s899_s3, %s473_s23  ;;  %v286_v6 = vld [vmem:[%s228_s6] sm:$0xf] }
  0x30   : > { %v298_v4 = vperm.slane %v296_v1, 0  ;;  %v299_v5 = vperm.slane %v296_v1, 1  ;;  %s281_s15 = scalar_lea.vmem [#allocation8], %s463_s26  ;;  %s323_s29 = sshll.u32 %s319_s10, 4  ;;  %s324_s29 = int_to_ptr.hbm [resolvable:$true] %s323_s29 }
  0x31   : > { %v291_v7 = vrot.slane %v290_v3, 6  ;;  %s321_s24 = sshll.u32 %s281_s15, 4  ;;  %s306_s9 = scalar_lea.sflag [#allocation4], %s845_s1  ;;  %s322_s24 = int_to_ptr.vmem [resolvable:$true] %s321_s24 }
  0x32   : > { %v300_v8 = vrot.slane %v299_v5, 6  ;;  %s650_s11 = sshra.s32 %s324_s29, 4  ;;  %s656_s28 = scalar_lea.hbm %s899_s3, 16  ;;  %s651_s11 = int_to_ptr.hbm [resolvable:$true] %s650_s11 }
  0x33   : > { %v293_v9 = vsel %vm292_vm0, %v289_v2, %v291_v7  ;;  %s652_s5 = scalar_lea.hbm %s651_s11, 4  ;;  %p657_p6 = scmp.lt.s32.totalorder %s651_s11, %s899_s3 }
  0x34   : > { %v301_v10 = vsel %vm292_vm0, %v298_v4, %v300_v8  ;;  %v295_v11 = vmul.f32 %v293_v9, %v286_v6  ;;  %p653_p3 = scmp.ne.s32.totalorder %s651_s11, %s652_s5  ;;  %p658_p7 = scmp.lt.s32.totalorder %s656_s28, %s652_s5 }
  0x36   : > { %v303_v12 = vadd.f32 %v301_v10, %v295_v11  ;;  %p654_p4 = pnand %p653_p3, %p799_p9  ;;  %p659_p8 = por %p658_p7, %p657_p6 }
  0x38   : > { %304 = vst [vmem:[%s281_s15] sm:$0xf] %v303_v12  ;;  %p655_p5 = pneg %p654_p4 }
  0x3a   : > { %p660_p10 = pnand %p659_p8, %p655_p5 }
  0x3c   : > { %663 = shalt.err (!%p660_p10)
}
  0x3d   : > { %480 = dma.vmem_to_hbm [thread:$0]  (%p799_p9), %s322_s24, 64, %s324_s29, %s306_s9  }
  0x3e PF: > { %p497_p12 = scmp.ge.s32.totalorder %s722_s17, 2  ;;  %s335_s1 = sand.u32 1, %s702_s12  }
  0x3f   : > { %s336_s30 = scalar_lea.sflag [#allocation4], %s335_s1 }
  0x40   : > { %p493_p13 = pnand %p497_p12, %p806_p11 }
  0x42   : > { %p494_p0 = pneg %p493_p13 }
  0x44   : > { %697 = dma.done.wait (%p494_p0), %s336_s30, 64  }
  0x45   : > { %699 = vsyncadd (%p494_p0), %s336_s30, 4294967232  ;;  %s22_s17 = sadd.s32 1, %s722_s17   ;;  %s911_s20 = sld [smem:[#allocation13_spill]] }
  0x46   : > { %p19_p1 = scmp.ge.s32.totalorder %s22_s17, 6   ;;  %s912_s25 = sld [smem:[#allocation12_spill]] }
  0x47   : > { %s913_s12 = smov %s706_s13  ;;  %s914_s13 = smov %s710_s14 }
  0x48   : > { %s916_s15 = smov %s718_s16  ;;  %21 = sbr.rel (!%p19_p1) target bundleno = 10 (0xa), region = 101 }
  0x4b   : > { %s915_s14 = smov %s911_s20 }
  0x4c   : > { %s917_s16 = smov %s912_s25 }
  0x4d   :  { %342 = vsyncpa [#allocation3], 1 }
  0x4e   :  { %344 = vsyncpa [#allocation3 + $0x1], 1 }
  0x4f   :  { %345 = vsyncpa [#allocation6], 1 }
  0x50   :  { %347 = vsyncpa [#allocation6 + $0x1], 1 }
  0x51   :  { %348 = vsyncpa [#allocation4], 1 }
  0x52   :  { %350 = vsyncpa [#allocation4 + $0x1], 1 }

</bundles_post_ra>
